<compile_context>
chip_gen: v5e
topology: v5e:2x2
jax: 0.10.0
libtpu: 0.0.40
codegen_flags: <defaults>
</compile_context>

<pallas_src>
import jax
import jax.numpy as jnp
from jax.experimental import pallas as pl
from jax.experimental.pallas import tpu as pltpu


def _add_pos_kernel(x_ref, pos_ref, o_ref):
    # x_ref / o_ref: (TB, TN) tile; pos_ref: (1, TN) tile broadcast over rows.
    o_ref[...] = x_ref[...] + pos_ref[...]


def _vmem_budget():
    """Generation-aware VMEM sizing -> (tile_budget_bytes, vmem_limit_bytes)."""
    try:
        phys = int(pltpu.get_tpu_info().vmem_capacity_bytes)
    except Exception:
        phys = 64 * 1024 * 1024  # conservative fallback: v7x has the smallest VMEM
    limit = (phys * 3) // 4                      # 48 MiB on v7x, 96 MiB on v5e/v6e
    budget = max(16 * 1024 * 1024, limit - 8 * 1024 * 1024)
    return budget, limit


def _round_up(x, m):
    return ((x + m - 1) // m) * m


def _choose_tiles(B, N, itemsize, budget):
    """Pick (TB, TN) row/lane tiles for the flattened [B, N] view.

    Budget model (double-buffered x in + out, double-buffered pos row):
        (2*TB*TN + 2*TB*TN + 2*TN) * itemsize <= budget
    """
    sub_mult = {4: 8, 2: 16, 1: 32}.get(itemsize, 8)
    elems = budget // itemsize

    # --- Lane tile -------------------------------------------------------
    # Prefer TN = N: fully contiguous (TB, N) HBM blocks, fewer DMA
    # descriptors, and the pos row is fetched exactly once for the kernel.
    if N % 128 != 0 or N * (4 * sub_mult + 2) <= elems:
        # Ragged N must use the full extent anyway (only legal lane block);
        # the raised vmem_limit below provides extra headroom in that case.
        TN = N
    else:
        cap = elems // (4 * sub_mult + 2)
        TN = min(N, max(128, (cap // 128) * 128))

    # --- Row tile: grow to fill the budget in sublane multiples -----------
    cap_rows = max((elems - 2 * TN) // (4 * TN), 1)
    TB = max(sub_mult, (cap_rows // sub_mult) * sub_mult)
    if TB >= B:
        TB = B  # full-extent row block is always legal (no padding needed)
    # else: TB is a sublane multiple; pl.cdiv handles the partial tail block.

    # --- Multi-TensorCore chips (v7x): avoid a 1x1 grid on real problems ---
    if B * N * itemsize > (4 << 20):
        nn, nb = -(-N // TN), -(-B // TB)
        if nn == 1 and nb == 1:
            if B > sub_mult:
                TB = max(sub_mult, _round_up((B + 1) // 2, sub_mult))
            elif N % 256 == 0:
                TN = N // 2
    return TB, TN


def position_embedding_forward(x: jax.Array, pos_emb: jax.Array,
                               *, donate_x: bool = False) -> jax.Array:
    """x: [B, S, D], pos_emb: [1, S, D] -> [B, S, D] (x + pos_emb)."""
    B, S, D = x.shape
    assert pos_emb.shape == (1, S, D)

    dtype = x.dtype
    # Parameter follows the activation dtype (mixed-precision friendly); note
    # torch type promotion for bf16 x + f32 param would instead upcast to f32.
    pos_emb = pos_emb.astype(dtype)

    N = S * D
    x2 = x.reshape(B, N)              # free: contiguous row-major reshape
    pos2 = pos_emb.reshape(1, N)

    itemsize = jnp.dtype(dtype).itemsize
    budget, vmem_limit = _vmem_budget()
    TB, TN = _choose_tiles(B, N, itemsize, budget)
    nn = pl.cdiv(N, TN)
    nb = pl.cdiv(B, TB)

    # Grid order: lane tiles outer, batch tiles inner, so the pos tile (whose
    # block index depends only on the lane tile) stays resident across the
    # inner batch loop and is not re-fetched per batch block.
    grid_spec = pl.GridSpec(
        grid=(nn, nb),
        in_specs=[
            pl.BlockSpec((TB, TN), lambda j, i: (i, j)),   # x rows
            pl.BlockSpec((1, TN), lambda j, i: (0, j)),    # pos (broadcast over B)
        ],
        out_specs=pl.BlockSpec((TB, TN), lambda j, i: (i, j)),
    )

    out2 = pl.pallas_call(
        _add_pos_kernel,
        out_shape=jax.ShapeDtypeStruct((B, N), dtype),
        grid_spec=grid_spec,
        compiler_params=pltpu.CompilerParams(
            dimension_semantics=("parallel", "parallel"),
            vmem_limit_bytes=vmem_limit,
        ),
        # When the caller donates x (dead after this op), reuse its HBM buffer.
        input_output_aliases={0: 0} if donate_x else {},
    )(x2, pos2)

    return out2.reshape(B, S, D)


if __name__ == "__main__":
    # Small shapes implied by the module: batch=2, input_seq=8, d_model=32.
    B, S, D = 2, 8, 32
    key = jax.random.PRNGKey(0)
    kx, kp = jax.random.split(key)

    x = jax.random.normal(kx, (B, S, D), dtype=jnp.float32)
    # nn.Parameter(torch.zeros(1, input_seq, d_model)) is zero at init; use a
    # deterministic non-zero parameter so the add is actually exercised.
    pos_emb = 0.01 * jax.random.normal(kp, (1, S, D), dtype=jnp.float32)

    out = jax.block_until_ready(position_embedding_forward(x, pos_emb))
    ref = x + pos_emb
    assert out.shape == (B, S, D)
    assert out.dtype == x.dtype
    assert jnp.allclose(out, ref, atol=1e-6, rtol=1e-6)

    # bf16 activations with an f32 parameter (common mixed-precision setup):
    # the wrapper casts pos_emb to x.dtype, matching the bf16 reference.
    x_bf16 = x.astype(jnp.bfloat16)
    out_bf16 = jax.block_until_ready(position_embedding_forward(x_bf16, pos_emb))
    ref_bf16 = x_bf16 + pos_emb.astype(jnp.bfloat16)
    assert out_bf16.dtype == jnp.bfloat16
    assert jnp.allclose(out_bf16.astype(jnp.float32), ref_bf16.astype(jnp.float32))

    # Larger, lane-aligned shape: exercises the budget-driven TB growth and the
    # multi-step / multi-core grid paths.
    B2, S2, D2 = 64, 128, 64
    x_big = jax.random.normal(kx, (B2, S2, D2), dtype=jnp.float32)
    p_big = 0.01 * jax.random.normal(kp, (1, S2, D2), dtype=jnp.float32)
    out_big = jax.block_until_ready(position_embedding_forward(x_big, p_big))
    assert jnp.allclose(out_big, x_big + p_big, atol=1e-6, rtol=1e-6)

    # Ragged shape (N not a multiple of 128, B not a sublane multiple):
    # exercises the full-extent lane block and partial-tail row paths.
    B3, S3, D3 = 3, 7, 33
    x_rag = jax.random.normal(kx, (B3, S3, D3), dtype=jnp.float32)
    p_rag = 0.01 * jax.random.normal(kp, (1, S3, D3), dtype=jnp.float32)
    out_rag = jax.block_until_ready(position_embedding_forward(x_rag, p_rag))
    assert jnp.allclose(out_rag, x_rag + p_rag, atol=1e-6, rtol=1e-6)

    print("KERNEL_OK")
</pallas_src>

<mosaic_0001>
module attributes {stable_mosaic.version = 11 : i64} {
  func.func @_add_pos_kernel(%arg0: i32, %arg1: i32, %arg2: memref<2x256xf32, #tpu.memory_space<vmem>>, %arg3: memref<1x256xf32, #tpu.memory_space<vmem>>, %arg4: memref<2x256xf32, #tpu.memory_space<vmem>>) attributes {dimension_semantics = [#tpu.dimension_semantics<parallel>, #tpu.dimension_semantics<parallel>], iteration_bounds = array<i64: 1, 1>, scalar_prefetch = 0 : i64, scratch_operands = 0 : i64, tpu.core_type = #tpu.core_type<tc>, window_params = [{transform_indices = @transform_0, window_bounds = array<i64: 2, 256>}, {transform_indices = @transform_1, window_bounds = array<i64: 1, 256>}, {transform_indices = @transform_2, window_bounds = array<i64: 2, 256>}]} {
    %c0 = arith.constant 0 : index
    %c0_0 = arith.constant 0 : index
    %0 = vector.load %arg2[%c0, %c0_0] : memref<2x256xf32, #tpu.memory_space<vmem>>, vector<2x256xf32>
    %c0_1 = arith.constant 0 : index
    %c0_2 = arith.constant 0 : index
    %1 = vector.load %arg3[%c0_1, %c0_2] : memref<1x256xf32, #tpu.memory_space<vmem>>, vector<1x256xf32>
    %2 = vector.broadcast %1 : vector<1x256xf32> to vector<2x256xf32>
    %3 = arith.addf %0, %2 : vector<2x256xf32>
    %c0_3 = arith.constant 0 : index
    %c0_4 = arith.constant 0 : index
    %4 = vector.load %arg4[%c0_3, %c0_4] : memref<2x256xf32, #tpu.memory_space<vmem>>, vector<2x256xf32>
    tpu.vector_store %arg4[%c0_3, %c0_4], %3 {strides = array<i32>} : memref<2x256xf32, #tpu.memory_space<vmem>>, vector<2x256xf32>,
    return
  }
  func.func @transform_0(%arg0: i32, %arg1: i32) -> (i32, i32) {
    %c0_i32 = arith.constant 0 : i32
    return %arg1, %arg0 : i32, i32
  }
  func.func @transform_1(%arg0: i32, %arg1: i32) -> (i32, i32) {
    %c0_i32 = arith.constant 0 : i32
    %c0_i32_0 = arith.constant 0 : i32
    return %c0_i32, %arg0 : i32, i32
  }
  func.func @transform_2(%arg0: i32, %arg1: i32) -> (i32, i32) {
    %c0_i32 = arith.constant 0 : i32
    return %arg1, %arg0 : i32, i32
  }
}

</mosaic_0001>

<bundles_post_ra>
// kernel: tpu_custom_call.1
= control target key start
LH: loop header
LB: loop body
LE: loop exit
PB: predicated region body
PF: predicated region fallthrough
CT: control target
= control target key end

     0   :  { %7 = vsyncpa [#allocation3], 0  ;;  %s177_s0 = inlined_call_operand.hbm [shape: f32[2,256], index: 0, kind: input, shape index: {}]   ;;  %s178_s1 = inlined_call_operand.hbm [shape: f32[1,256], index: 1, kind: input, shape index: {}]   ;;  %s179_s2 = inlined_call_operand.hbm [shape: f32[2,256], index: 2, kind: output, shape index: {}]  }
   0x1   :  { %8 = vsyncpa [#allocation6], 0 }
   0x2   :  { %9 = vsyncpa [#allocation4], 0  ;;  %s15_s11 = sshll.u32 %s177_s0, 4  ;;  %s150_s12 = smov [#allocation2]   ;;  %s16_s11 = int_to_ptr.hbm [resolvable:$true] %s15_s11 }
   0x3   :  { %s17_s13 = sshll.u32 %s150_s12, 4  ;;  %s26_s16 = sshll.u32 %s178_s1, 4  ;;  %s18_s13 = int_to_ptr.vmem [resolvable:$true] %s17_s13  ;;  %s27_s16 = int_to_ptr.hbm [resolvable:$true] %s26_s16 }
   0x4   :  { %20 = dma.hbm_to_vmem [thread:$0]  %s16_s11, 64, %s18_s13, [#allocation3]  }
   0x5   :  { %s151_s17 = smov [#allocation5]  }
   0x6   :  { %s28_s18 = sshll.u32 %s151_s17, 4  ;;  %s29_s18 = int_to_ptr.vmem [resolvable:$true] %s28_s18 }
   0x7   :  { %31 = dma.hbm_to_vmem [thread:$0]  %s27_s16, 32, %s29_s18, [#allocation6]  }
   0x8   :  { %144 = dma.done.wait [#allocation3], 64  }
   0x9   :  { %145 = vsyncadd [#allocation3], 4294967232 }
   0xa   :  { %146 = dma.done.wait [#allocation6], 32  }
   0xb   :  { %147 = vsyncadd [#allocation6], 4294967264  ;;  %v41_v0 = vld [vmem:[#allocation5] sm:$0x3]  ;;  %vm46_vm0 = vcmask 1041408   ;;  %s152_s0 = smov [#allocation7]  }
   0xc   :  { %v43_v1 = vperm.slane %v41_v0, 0  ;;  %v44_v2 = vperm.slane %v41_v0, 1  ;;  %v40_v3 = vld [vmem:[#allocation2] sm:$0xf]  ;;  %s56_s19 = sshll.u32 %s152_s0, 4  ;;  %s58_s21 = sshll.u32 %s179_s2, 4  ;;  %s57_s19 = int_to_ptr.vmem [resolvable:$true] %s56_s19  ;;  %s59_s21 = int_to_ptr.hbm [resolvable:$true] %s58_s21 }
   0xe   :  { %v45_v4 = vrot.slane %v44_v2, 6 }
  0x10   :  { %v47_v5 = vsel %vm46_vm0, %v43_v1, %v45_v4 }
  0x11   :  { %v49_v6 = vadd.f32 %v47_v5, %v40_v3 }
  0x13   :  { %50 = vst [vmem:[#allocation7] sm:$0xf] %v49_v6 }
  0x14   :  { %61 = dma.vmem_to_hbm [thread:$0]  %s57_s19, 64, %s59_s21, [#allocation4]  }
  0x15   :  { %148 = dma.done.wait [#allocation4], 64  }
  0x16   :  { %149 = vsyncadd [#allocation4], 4294967232 }
  0x17   :  { %66 = vsyncpa [#allocation3], 1 }
  0x18   :  { %67 = vsyncpa [#allocation6], 1 }
  0x19   :  { %68 = vsyncpa [#allocation4], 1 }

</bundles_post_ra>
